<compile_context>
chip_gen: v6e
topology: v6e:2x2x1
jax: 0.10.0
libtpu: 0.0.40
codegen_flags: <defaults>
</compile_context>

<pallas_src>
import math

import jax
import jax.numpy as jnp
from jax.experimental import pallas as pl
from jax.experimental.pallas import tpu as pltpu


def _copy_kernel(x_ref, o_ref):
    # Pure memory traffic: one lane-dense VMEM tile in, same tile out.
    o_ref[...] = x_ref[...]


def _sublane_align(dtype) -> int:
    # Sub-32-bit dtypes pack along sublanes: 8 rows f32, 16 bf16, 32 int8/fp8.
    itemsize = jnp.dtype(dtype).itemsize
    return 8 * max(1, 4 // itemsize)


def _target_block_bytes() -> int:
    # Resident VMEM ~= 4 x block (double-buffered input + output); keep it
    # under the scoped-VMEM default of each generation without extra flags.
    try:
        kind = jax.devices()[0].device_kind.lower()
    except Exception:
        kind = ""
    if "v5" in kind:
        return 3 * 1024 * 1024   # 12 MiB resident < 16 MiB scoped default (v5e)
    if "v6" in kind or "v7" in kind:
        return 6 * 1024 * 1024   # 24 MiB resident < 32 MiB scoped, < 64 MiB physical (v7x)
    return 2 * 1024 * 1024


def _largest_aligned_divisor(extent: int, align: int, cap: int):
    """Largest multiple of `align` that divides `extent` and is <= cap, or None."""
    t = (min(cap, extent) // align) * align
    while t >= align:
        if extent % t == 0:
            return t
        t -= align
    return None


def _row_tile(rows: int, sub_align: int, row_bytes: int, target_bytes: int) -> int:
    """Row-tile: multiple of `sub_align` (or the full extent if rows is small),
    sized so one block stays within `target_bytes`."""
    max_rows = max(sub_align, ((target_bytes // max(1, row_bytes)) // sub_align) * sub_align)
    tr = min(rows, max_rows)
    if tr < rows:
        tr = max(sub_align, (tr // sub_align) * sub_align)
    return tr


def _flat_slab_copy(x2d: jax.Array, target_bytes: int, sub_align: int) -> jax.Array:
    """Copy as contiguous (R, L) slabs; requires total elements % 128 == 0."""
    n, d = x2d.shape
    dtype = x2d.dtype
    itemsize = jnp.dtype(dtype).itemsize
    total = n * d

    # Lane width: multiple of 128 dividing `total`, small enough that even the
    # minimum (sub_align x L) block fits the byte budget.
    lane_cap = max(128, ((target_bytes // (sub_align * itemsize)) // 128) * 128)
    lanes = _largest_aligned_divisor(total, 128, lane_cap)
    rows = total // lanes
    tr = _row_tile(rows, sub_align, lanes * itemsize, target_bytes)

    x_slab = jnp.reshape(x2d, (rows, lanes))  # metadata-only (same layout)
    out = pl.pallas_call(
        _copy_kernel,
        out_shape=jax.ShapeDtypeStruct((rows, lanes), dtype),
        grid=(pl.cdiv(rows, tr),),
        in_specs=[pl.BlockSpec((tr, lanes), lambda i: (i, 0))],
        out_specs=pl.BlockSpec((tr, lanes), lambda i: (i, 0)),
        compiler_params=pltpu.CompilerParams(dimension_semantics=("parallel",)),
    )(x_slab)
    return jnp.reshape(out, (n, d))  # metadata-only


def _tiled_2d_copy(x2d: jax.Array, target_bytes: int, sub_align: int) -> jax.Array:
    """Fallback when total elements are not 128-aligned: tile the (N, D) view
    with (8,128)-aligned blocks and cdiv grids (partial edge blocks)."""
    n, d = x2d.shape
    dtype = x2d.dtype
    itemsize = jnp.dtype(dtype).itemsize

    if d <= 128:
        td = d  # full-extent last dim (always legal)
    else:
        td_cap = max(128, ((target_bytes // (sub_align * itemsize)) // 128) * 128)
        td = max(128, min((d // 128) * 128, td_cap))
    tb = _row_tile(n, sub_align, td * itemsize, target_bytes)

    return pl.pallas_call(
        _copy_kernel,
        out_shape=jax.ShapeDtypeStruct((n, d), dtype),
        grid=(pl.cdiv(n, tb), pl.cdiv(d, td)),
        in_specs=[pl.BlockSpec((tb, td), lambda i, j: (i, j))],
        out_specs=pl.BlockSpec((tb, td), lambda i, j: (i, j)),
        compiler_params=pltpu.CompilerParams(
            dimension_semantics=("parallel", "parallel")
        ),
    )(x2d)


def flatten(x: jax.Array) -> jax.Array:
    """torch `x.view(x.size(0), -1)`: metadata-only row-major collapse (free)."""
    return jnp.reshape(x, (x.shape[0], -1))


def flatten_materialized(x: jax.Array) -> jax.Array:
    """Same semantics, but forces a freshly materialized (N, D) buffer via a
    Pallas copy.  Only use when a new buffer is genuinely required."""
    n = x.shape[0]
    d = math.prod(x.shape[1:]) if x.ndim > 1 else 1
    x2d = jnp.reshape(x, (n, d))  # metadata-only for contiguous row-major input

    sub_align = _sublane_align(x.dtype)
    target_bytes = _target_block_bytes()

    if (n * d) % 128 == 0 and n * d > 0:
        return _flat_slab_copy(x2d, target_bytes, sub_align)
    return _tiled_2d_copy(x2d, target_bytes, sub_align)


if __name__ == "__main__":
    key = jax.random.PRNGKey(0)
    # Small shape consistent with the module's forward: batch=2, C=4, H=W=16.
    x = jax.random.normal(key, (2, 4, 16, 16), dtype=jnp.float32)

    y_ref = jnp.reshape(x, (x.shape[0], -1))

    # Default path (the module's actual semantics): zero-cost reshape.
    y_view = jax.block_until_ready(flatten(x))

    # Pallas path: materialize a fresh flattened buffer via the copy kernel.
    y_copy = jax.block_until_ready(flatten_materialized(x))

    assert y_view.shape == (2, 4 * 16 * 16), y_view.shape
    assert y_copy.shape == (2, 4 * 16 * 16), y_copy.shape
    assert y_view.dtype == x.dtype and y_copy.dtype == x.dtype
    assert bool(jnp.all(y_view == y_ref))
    assert bool(jnp.all(y_copy == y_ref))

    print("KERNEL_OK")
</pallas_src>

<mosaic_0001>
module attributes {stable_mosaic.version = 11 : i64} {
  func.func @_copy_kernel(%arg0: i32, %arg1: memref<1x2048xf32, #tpu.memory_space<vmem>>, %arg2: memref<1x2048xf32, #tpu.memory_space<vmem>>) attributes {dimension_semantics = [#tpu.dimension_semantics<parallel>], iteration_bounds = array<i64: 1>, scalar_prefetch = 0 : i64, scratch_operands = 0 : i64, tpu.core_type = #tpu.core_type<tc>, window_params = [{transform_indices = @transform_0, window_bounds = array<i64: 1, 2048>}, {transform_indices = @transform_1, window_bounds = array<i64: 1, 2048>}]} {
    %c0 = arith.constant 0 : index
    %c0_0 = arith.constant 0 : index
    %0 = vector.load %arg1[%c0, %c0_0] : memref<1x2048xf32, #tpu.memory_space<vmem>>, vector<1x2048xf32>
    %c0_1 = arith.constant 0 : index
    %c0_2 = arith.constant 0 : index
    %1 = vector.load %arg2[%c0_1, %c0_2] : memref<1x2048xf32, #tpu.memory_space<vmem>>, vector<1x2048xf32>
    tpu.vector_store %arg2[%c0_1, %c0_2], %0 {strides = array<i32>} : memref<1x2048xf32, #tpu.memory_space<vmem>>, vector<1x2048xf32>,
    return
  }
  func.func @transform_0(%arg0: i32) -> (i32, i32) {
    %c0_i32 = arith.constant 0 : i32
    %c0_i32_0 = arith.constant 0 : i32
    return %arg0, %c0_i32 : i32, i32
  }
  func.func @transform_1(%arg0: i32) -> (i32, i32) {
    %c0_i32 = arith.constant 0 : i32
    %c0_i32_0 = arith.constant 0 : i32
    return %arg0, %c0_i32 : i32, i32
  }
}

</mosaic_0001>

<bundles_post_ra>
// kernel: tpu_custom_call.1
= control target key start
LH: loop header
LB: loop body
LE: loop exit
PB: predicated region body
PF: predicated region fallthrough
CT: control target
= control target key end

     0   :  { %6 = vsyncpa [#allocation3], 0  ;;  %s104_s0 = inlined_call_operand.hbm [shape: f32[1,2048], index: 0, kind: input, shape index: {}]   ;;  %s105_s1 = inlined_call_operand.hbm [shape: f32[1,2048], index: 1, kind: output, shape index: {}]  }
   0x1   :  { %7 = vsyncpa [#allocation4], 0  ;;  %s86_s6 = smov [#allocation2]  }
   0x2   :  { %s14_s7 = sshll.u32 %s86_s6, 4  ;;  %s15_s7 = int_to_ptr.vmem [resolvable:$true] %s14_s7 }
   0x3   :  { %s50_s8 = scalar_lea.vmem %s15_s7, 256  ;;  %p55_p1 = scmp.lt.s32.totalorder %s15_s7, %s15_s7 }
   0x4   :  { %p51_p0 = scmp.ne.s32.totalorder %s15_s7, %s50_s8  ;;  %p56_p2 = scmp.lt.s32.totalorder %s50_s8, %s50_s8 }
   0x6   :  { %p57_p3 = por %p56_p2, %p55_p1 }
   0x8   :  { %p58_p4 = pnand %p57_p3, %p51_p0 }
   0xa   :  { %61 = shalt.err (!%p58_p4)
}
   0xb   :  { %17 = dma.hbm_to_vmem [thread:$0]  %s104_s0, 256, %s15_s7, [#allocation3]  }
   0xc   :  { %82 = dma.done.wait [#allocation3], 256  }
   0xd   :  { %83 = vsyncadd [#allocation3], 4294967040  ;;  %s87_s11 = smov [#allocation5]   ;;  %v21_v0 = vld [vmem:[#allocation2] sm:$0xff]  ;;  %v22_v1 = vld [vmem:[#allocation2 + $0x8] sm:$0xff] }
   0xe   :  { %s31_s12 = sshll.u32 %s87_s11, 4  ;;  %23 = vst [vmem:[#allocation5] sm:$0xff] %v21_v0  ;;  %24 = vst [vmem:[#allocation5 + $0x8] sm:$0xff] %v22_v1  ;;  %s32_s12 = int_to_ptr.vmem [resolvable:$true] %s31_s12 }
   0xf   :  { %s62_s13 = scalar_lea.vmem %s32_s12, 256  ;;  %p67_p6 = scmp.lt.s32.totalorder %s32_s12, %s32_s12 }
  0x10   :  { %p63_p5 = scmp.ne.s32.totalorder %s32_s12, %s62_s13  ;;  %p68_p7 = scmp.lt.s32.totalorder %s62_s13, %s62_s13 }
  0x12   :  { %p69_p8 = por %p68_p7, %p67_p6 }
  0x14   :  { %p70_p9 = pnand %p69_p8, %p63_p5 }
  0x16   :  { %73 = shalt.err (!%p70_p9)
}
  0x17   :  { %34 = dma.vmem_to_hbm [thread:$0]  %s32_s12, 256, %s105_s1, [#allocation4]  }
  0x18   :  { %84 = dma.done.wait [#allocation4], 256  }
  0x19   :  { %85 = vsyncadd [#allocation4], 4294967040 }
  0x1a   :  { %38 = vsyncpa [#allocation3], 1 }
  0x1b   :  { %39 = vsyncpa [#allocation4], 1 }

</bundles_post_ra>
